<compile_context>
chip_gen: v6e
topology: v6e:2x2x1
jax: 0.10.0
libtpu: 0.0.40
codegen_flags: <defaults>
</compile_context>

<pallas_src>
import functools
import math

import jax
import jax.numpy as jnp
from jax.experimental import pallas as pl
from jax.experimental.pallas import tpu as pltpu

# Small Pegasus-like config.
D_MODEL = 32
N_HEADS = 4
HEAD_DIM = D_MODEL // N_HEADS
INNER_DIM = N_HEADS * HEAD_DIM


# ------------------------- Pallas kernel (hot path) -------------------------

def pegasus_sdpa_kernel(x_ref, wqkv_ref, bqkv_ref, wo_ref, bo_ref, *rest,
                        n_heads, head_dim, use_mask):
    """Fused Pegasus/BART SDPA self-attention for one batch element.

    x_ref:    [1, S, D]          hidden states block (bf16)
    wqkv_ref: [D, 3*INNER]       fused q|k|v weights (bf16, q part pre-scaled)
    bqkv_ref: [1, 3*INNER]       fused q|k|v biases  (f32, q part pre-scaled)
    wo_ref:   [INNER, D]         output projection weights (bf16)
    bo_ref:   [1, D]             output projection bias (f32)
    mask_ref: [1, 1, S]          additive key-padding mask (f32)   [optional]
    out_ref:  [1, S, D]
    """
    if use_mask:
        mask_ref, out_ref = rest
    else:
        (out_ref,) = rest

    h, hd = n_heads, head_dim
    inner = h * hd

    x = x_ref[0]                                     # [S, D] bf16
    s = x.shape[0]

    # --- fused QKV projection: one lane-dense 2-D MXU matmul, f32 accum ---
    qkv = jnp.dot(x, wqkv_ref[...],
                  preferred_element_type=jnp.float32)            # [S, 3*INNER]
    qkv = qkv + bqkv_ref[...]                                    # f32 bias

    def to_heads(t):                                 # [S, INNER] -> [H, S, hd], bf16
        return jnp.transpose(t.reshape(s, h, hd), (1, 0, 2)).astype(jnp.bfloat16)

    q = to_heads(qkv[:, 0 * inner:1 * inner])        # scale already folded in
    k = to_heads(qkv[:, 1 * inner:2 * inner])
    v = to_heads(qkv[:, 2 * inner:3 * inner])

    # --- all-head scores: contract head_dim, batch over heads (bf16 in, f32 out) ---
    scores = jax.lax.dot_general(
        q, k, dimension_numbers=(((2,), (2,)), ((0,), (0,))),
        preferred_element_type=jnp.float32)          # [H, S, S]
    if use_mask:
        scores = scores + mask_ref[...]              # [1,1,S] broadcasts over H, q

    # --- numerically stable softmax (deferred normalization) ---
    m = jnp.maximum(jnp.max(scores, axis=-1, keepdims=True), -1e30)
    p = jnp.exp(scores - m)                          # [H, S, S] f32, values <= 1
    denom = jnp.maximum(jnp.sum(p, axis=-1, keepdims=True), 1e-30)   # [H, S, 1]

    # --- unnormalized context, then normalize the small [H,S,hd] slab ---
    ctx = jax.lax.dot_general(
        p.astype(jnp.bfloat16), v,
        dimension_numbers=(((2,), (1,)), ((0,), (0,))),
        preferred_element_type=jnp.float32)          # [H, S, hd]
    ctx = ctx / denom                                # 16x less VPU work than p/denom

    # --- fused output projection: head reduction folded into the MXU ---
    ctx2 = jnp.transpose(ctx, (1, 0, 2)).reshape(s, inner).astype(jnp.bfloat16)
    out = jnp.dot(ctx2, wo_ref[...],
                  preferred_element_type=jnp.float32)            # [S, D]
    out = out + bo_ref[...]
    out_ref[0] = out.astype(out_ref.dtype)


def pegasus_attention_pallas(hidden_states, params, key_mask_b1s=None):
    """key_mask_b1s: optional additive key-padding mask of shape [B, 1, S] (f32)."""
    wqkv, bqkv, wo, bo = params
    B, S, D = hidden_states.shape
    H, HD = N_HEADS, HEAD_DIM
    use_mask = key_mask_b1s is not None

    x16 = hidden_states.astype(jnp.bfloat16)         # bf16 MXU operand, halves DMA

    in_specs = [
        pl.BlockSpec((1, S, D), lambda b: (b, 0, 0)),           # hidden states
        pl.BlockSpec((D, 3 * INNER_DIM), lambda b: (0, 0)),     # fused QKV weights
        pl.BlockSpec((1, 3 * INNER_DIM), lambda b: (0, 0)),     # fused QKV biases
        pl.BlockSpec((INNER_DIM, D), lambda b: (0, 0)),         # out-proj weights
        pl.BlockSpec((1, D), lambda b: (0, 0)),                 # out-proj bias
    ]
    operands = [x16, wqkv, bqkv, wo, bo]
    if use_mask:
        in_specs.append(pl.BlockSpec((1, 1, S), lambda b: (b, 0, 0)))
        operands.append(key_mask_b1s.astype(jnp.float32))

    kernel = functools.partial(pegasus_sdpa_kernel,
                               n_heads=H, head_dim=HD, use_mask=use_mask)
    return pl.pallas_call(
        kernel,
        out_shape=jax.ShapeDtypeStruct((B, S, D), hidden_states.dtype),
        grid=(B,),
        in_specs=in_specs,
        out_specs=pl.BlockSpec((1, S, D), lambda b: (b, 0, 0)),
        compiler_params=pltpu.CompilerParams(dimension_semantics=("parallel",)),
    )(*operands)


# --------------------- host-side parameter preparation ----------------------

def prepare_params(wq, bq, wk, bk, wv, bv, wo, bo):
    """Fold 1/sqrt(head_dim) into Wq/bq, fuse Q|K|V column-wise, cast MXU
    operands to bf16 (biases stay f32).  Weights are stored transposed w.r.t.
    torch.nn.Linear: wq/wk/wv are [D, INNER], wo is [INNER, D]."""
    scaling = HEAD_DIM ** -0.5
    wqkv = jnp.concatenate([wq * scaling, wk, wv], axis=1).astype(jnp.bfloat16)   # [D, 3*INNER]
    bqkv = jnp.concatenate([bq * scaling, bk, bv])[None, :].astype(jnp.float32)   # [1, 3*INNER]
    wo_p = wo.astype(jnp.bfloat16)                                                # [INNER, D]
    bo_p = bo[None, :].astype(jnp.float32)                                        # [1, D]
    return wqkv, bqkv, wo_p, bo_p


def pegasus_attention_forward(hidden_states, params, attention_mask=None,
                              past_key_value=None):
    """Mirrors optimum's bart_forward return structure: (attn_out, None, past_kv).
    attention_mask: optional additive key-padding mask [B, S] (0 keep / -1e9 mask)."""
    mask_b1s = None
    if attention_mask is not None:
        mask_b1s = attention_mask.astype(jnp.float32)[:, None, :]   # [B, 1, S]
    attn_out = pegasus_attention_pallas(hidden_states, params, mask_b1s)
    return attn_out, None, past_key_value


# --------------------------- pure-JAX references ----------------------------

def reference_matched(hidden, params, key_mask):
    """Same bf16-prepared parameters & dtype pipeline as the kernel."""
    wqkv, bqkv, wo, bo = params
    B, S, _ = hidden.shape
    hd, inner = HEAD_DIM, INNER_DIM
    x16 = hidden.astype(jnp.bfloat16)
    qkv = jnp.einsum('bsd,de->bse', x16, wqkv,
                     preferred_element_type=jnp.float32) + bqkv

    def heads(t):                                    # [B,S,INNER] -> [B,H,S,hd] bf16
        return t.reshape(B, S, N_HEADS, hd).transpose(0, 2, 1, 3).astype(jnp.bfloat16)

    q = heads(qkv[..., :inner]); k = heads(qkv[..., inner:2 * inner])
    v = heads(qkv[..., 2 * inner:])
    scores = jnp.einsum('bhqd,bhkd->bhqk', q, k, preferred_element_type=jnp.float32)
    if key_mask is not None:
        scores = scores + key_mask[:, None, None, :]
    m = jnp.maximum(jnp.max(scores, axis=-1, keepdims=True), -1e30)
    p = jnp.exp(scores - m)
    denom = jnp.maximum(jnp.sum(p, axis=-1, keepdims=True), 1e-30)
    ctx = jnp.einsum('bhqk,bhkd->bhqd', p.astype(jnp.bfloat16), v,
                     preferred_element_type=jnp.float32) / denom
    ctx2 = ctx.transpose(0, 2, 1, 3).reshape(B, S, inner).astype(jnp.bfloat16)
    return jnp.einsum('bsi,id->bsd', ctx2, wo,
                      preferred_element_type=jnp.float32) + bo


def reference_f32(hidden, wq, bq, wk, bk, wv, bv, wo, bo, key_mask):
    """Full-precision semantic reference (Pegasus/BART SDPA self-attention)."""
    B, S, _ = hidden.shape
    q = (hidden @ wq + bq) * (HEAD_DIM ** -0.5)
    k = hidden @ wk + bk
    v = hidden @ wv + bv

    def split(t):
        return t.reshape(B, S, N_HEADS, HEAD_DIM).transpose(0, 2, 1, 3)

    qh, kh, vh = split(q), split(k), split(v)
    scores = jnp.einsum('bhqd,bhkd->bhqk', qh, kh)
    if key_mask is not None:
        scores = scores + key_mask[:, None, None, :]
    p = jax.nn.softmax(scores, axis=-1)
    ctx = jnp.einsum('bhqk,bhkd->bhqd', p, vh)
    ctx = ctx.transpose(0, 2, 1, 3).reshape(B, S, INNER_DIM)
    return ctx @ wo + bo


# ----------------------------------- main ------------------------------------

if __name__ == "__main__":
    B, S = 2, 8
    ks = jax.random.split(jax.random.PRNGKey(0), 10)
    hidden = jax.random.normal(ks[0], (B, S, D_MODEL), jnp.float32)

    def init_w(k, shape):
        return jax.random.normal(k, shape, jnp.float32) * (1.0 / math.sqrt(shape[0]))

    wq = init_w(ks[1], (D_MODEL, INNER_DIM)); bq = 0.1 * jax.random.normal(ks[2], (INNER_DIM,))
    wk = init_w(ks[3], (D_MODEL, INNER_DIM)); bk = 0.1 * jax.random.normal(ks[4], (INNER_DIM,))
    wv = init_w(ks[5], (D_MODEL, INNER_DIM)); bv = 0.1 * jax.random.normal(ks[6], (INNER_DIM,))
    wo = init_w(ks[7], (INNER_DIM, D_MODEL)); bo = 0.1 * jax.random.normal(ks[8], (D_MODEL,))

    params = prepare_params(wq, bq, wk, bk, wv, bv, wo, bo)

    # Additive key-padding mask [B, S]: batch 1 masks its last two key positions.
    key_valid = jnp.ones((B, S), dtype=bool).at[1, S - 2:].set(False)
    pad_mask = jnp.where(key_valid, 0.0, -1e9).astype(jnp.float32)

    for m in (None, pad_mask):
        out, attn_weights, present = pegasus_attention_forward(
            hidden, params, attention_mask=m)
        out = jax.block_until_ready(out)
        assert attn_weights is None and present is None

        ref_m = reference_matched(hidden, params, m)
        ref_f = reference_f32(hidden, wq, bq, wk, bk, wv, bv, wo, bo, m)

        err_m = float(jnp.max(jnp.abs(out - ref_m)))
        assert err_m < 3e-2, f"bf16-matched reference max abs err {err_m}"
        rel_l2 = float(jnp.linalg.norm(out - ref_f) / jnp.linalg.norm(ref_f))
        assert rel_l2 < 5e-2, f"f32 semantic reference rel-L2 err {rel_l2}"

    print("KERNEL_OK")
</pallas_src>

<mosaic_0001>
module attributes {stable_mosaic.version = 11 : i64} {
  func.func @pegasus_sdpa_kernel(%arg0: i32, %arg1: memref<1x8x32xbf16, #tpu.memory_space<vmem>>, %arg2: memref<32x96xbf16, #tpu.memory_space<vmem>>, %arg3: memref<1x96xf32, #tpu.memory_space<vmem>>, %arg4: memref<32x32xbf16, #tpu.memory_space<vmem>>, %arg5: memref<1x32xf32, #tpu.memory_space<vmem>>, %arg6: memref<1x8x32xf32, #tpu.memory_space<vmem>>) attributes {dimension_semantics = [#tpu.dimension_semantics<parallel>], iteration_bounds = array<i64: 2>, scalar_prefetch = 0 : i64, scratch_operands = 0 : i64, tpu.core_type = #tpu.core_type<tc>, window_params = [{transform_indices = @transform_0, window_bounds = array<i64: 1, 8, 32>}, {pipeline_mode = #tpu.pipeline_mode<synchronous>, transform_indices = @transform_1, window_bounds = array<i64: 32, 96>}, {pipeline_mode = #tpu.pipeline_mode<synchronous>, transform_indices = @transform_2, window_bounds = array<i64: 1, 96>}, {pipeline_mode = #tpu.pipeline_mode<synchronous>, transform_indices = @transform_3, window_bounds = array<i64: 32, 32>}, {pipeline_mode = #tpu.pipeline_mode<synchronous>, transform_indices = @transform_4, window_bounds = array<i64: 1, 32>}, {transform_indices = @transform_5, window_bounds = array<i64: 1, 8, 32>}]} {
    %c0 = arith.constant 0 : index
    %c0_0 = arith.constant 0 : index
    %c0_1 = arith.constant 0 : index
    %0 = vector.load %arg1[%c0, %c0_0, %c0_1] : memref<1x8x32xbf16, #tpu.memory_space<vmem>>, vector<1x8x32xbf16>
    %1 = vector.shape_cast %0 : vector<1x8x32xbf16> to vector<8x32xbf16>
    %c0_2 = arith.constant 0 : index
    %c0_3 = arith.constant 0 : index
    %2 = vector.load %arg2[%c0_2, %c0_3] : memref<32x96xbf16, #tpu.memory_space<vmem>>, vector<32x96xbf16>
    %cst = arith.constant dense<0.000000e+00> : vector<8x96xf32>
    %3 = tpu.matmul %1, %2, %cst {dimension_numbers = #tpu.dot_dimension_numbers<[1], [0], [0], [1], [0, 0, 1, 1], [], []>} : vector<8x32xbf16>, vector<32x96xbf16>, vector<8x96xf32> -> vector<8x96xf32>
    %c0_4 = arith.constant 0 : index
    %c0_5 = arith.constant 0 : index
    %4 = vector.load %arg3[%c0_4, %c0_5] : memref<1x96xf32, #tpu.memory_space<vmem>>, vector<1x96xf32>
    %5 = vector.broadcast %4 : vector<1x96xf32> to vector<8x96xf32>
    %6 = arith.addf %3, %5 : vector<8x96xf32>
    %7 = vector.extract_strided_slice %6 {offsets = [0, 0], sizes = [8, 32], strides = [1, 1]} : vector<8x96xf32> to vector<8x32xf32>
    %8 = vector.shape_cast %7 : vector<8x32xf32> to vector<8x4x8xf32>
    %9 = tpu.transpose %8, [1, 0, 2] : vector<8x4x8xf32> -> vector<4x8x8xf32>
    %10 = arith.truncf %9 : vector<4x8x8xf32> to vector<4x8x8xbf16>
    %11 = vector.extract_strided_slice %6 {offsets = [0, 32], sizes = [8, 32], strides = [1, 1]} : vector<8x96xf32> to vector<8x32xf32>
    %12 = vector.shape_cast %11 : vector<8x32xf32> to vector<8x4x8xf32>
    %13 = tpu.transpose %12, [1, 0, 2] : vector<8x4x8xf32> -> vector<4x8x8xf32>
    %14 = arith.truncf %13 : vector<4x8x8xf32> to vector<4x8x8xbf16>
    %15 = vector.extract_strided_slice %6 {offsets = [0, 64], sizes = [8, 32], strides = [1, 1]} : vector<8x96xf32> to vector<8x32xf32>
    %16 = vector.shape_cast %15 : vector<8x32xf32> to vector<8x4x8xf32>
    %17 = tpu.transpose %16, [1, 0, 2] : vector<8x4x8xf32> -> vector<4x8x8xf32>
    %18 = arith.truncf %17 : vector<4x8x8xf32> to vector<4x8x8xbf16>
    %cst_6 = arith.constant dense<0.000000e+00> : vector<4x8x8xf32>
    %19 = tpu.matmul %10, %14, %cst_6 {dimension_numbers = #tpu.dot_dimension_numbers<[2], [2], [1], [1], [0, 0, 0, 1, 1, 1], [0], [0]>} : vector<4x8x8xbf16>, vector<4x8x8xbf16>, vector<4x8x8xf32> -> vector<4x8x8xf32>
    %cst_7 = arith.constant dense<0xFF800000> : vector<4x8xf32>
    %20 = vector.multi_reduction <maximumf>, %19, %cst_7 [2] : vector<4x8x8xf32> to vector<4x8xf32>
    %21 = vector.shape_cast %20 : vector<4x8xf32> to vector<4x8x1xf32>
    %cst_8 = arith.constant -1.000000e+30 : f32
    %22 = vector.broadcast %cst_8 : f32 to vector<4x8x1xf32>
    %23 = arith.maximumf %21, %22 : vector<4x8x1xf32>
    %24 = vector.broadcast %23 : vector<4x8x1xf32> to vector<4x8x8xf32>
    %25 = arith.subf %19, %24 : vector<4x8x8xf32>
    %26 = math.exp %25 : vector<4x8x8xf32>
    %cst_9 = arith.constant dense<0.000000e+00> : vector<4x8xf32>
    %27 = vector.multi_reduction <add>, %26, %cst_9 [2] : vector<4x8x8xf32> to vector<4x8xf32>
    %28 = vector.shape_cast %27 : vector<4x8xf32> to vector<4x8x1xf32>
    %cst_10 = arith.constant 1.000000e-30 : f32
    %29 = vector.broadcast %cst_10 : f32 to vector<4x8x1xf32>
    %30 = arith.maximumf %28, %29 : vector<4x8x1xf32>
    %31 = arith.truncf %26 : vector<4x8x8xf32> to vector<4x8x8xbf16>
    %cst_11 = arith.constant dense<0.000000e+00> : vector<4x8x8xf32>
    %32 = tpu.matmul %31, %18, %cst_11 {dimension_numbers = #tpu.dot_dimension_numbers<[2], [1], [1], [2], [0, 0, 0, 1, 1, 2], [0], [0]>} : vector<4x8x8xbf16>, vector<4x8x8xbf16>, vector<4x8x8xf32> -> vector<4x8x8xf32>
    %33 = vector.broadcast %30 : vector<4x8x1xf32> to vector<4x8x8xf32>
    %34 = arith.divf %32, %33 : vector<4x8x8xf32>
    %35 = tpu.transpose %34, [1, 0, 2] : vector<4x8x8xf32> -> vector<8x4x8xf32>
    %36 = vector.shape_cast %35 : vector<8x4x8xf32> to vector<8x32xf32>
    %37 = arith.truncf %36 : vector<8x32xf32> to vector<8x32xbf16>
    %c0_12 = arith.constant 0 : index
    %c0_13 = arith.constant 0 : index
    %38 = vector.load %arg4[%c0_12, %c0_13] : memref<32x32xbf16, #tpu.memory_space<vmem>>, vector<32x32xbf16>
    %cst_14 = arith.constant dense<0.000000e+00> : vector<8x32xf32>
    %39 = tpu.matmul %37, %38, %cst_14 {dimension_numbers = #tpu.dot_dimension_numbers<[1], [0], [0], [1], [0, 0, 1, 1], [], []>} : vector<8x32xbf16>, vector<32x32xbf16>, vector<8x32xf32> -> vector<8x32xf32>
    %c0_15 = arith.constant 0 : index
    %c0_16 = arith.constant 0 : index
    %40 = vector.load %arg5[%c0_15, %c0_16] : memref<1x32xf32, #tpu.memory_space<vmem>>, vector<1x32xf32>
    %41 = vector.broadcast %40 : vector<1x32xf32> to vector<8x32xf32>
    %42 = arith.addf %39, %41 : vector<8x32xf32>
    %c0_17 = arith.constant 0 : index
    %c0_18 = arith.constant 0 : index
    %c0_19 = arith.constant 0 : index
    %43 = vector.load %arg6[%c0_17, %c0_18, %c0_19] : memref<1x8x32xf32, #tpu.memory_space<vmem>>, vector<1x8x32xf32>
    %44 = vector.shape_cast %43 : vector<1x8x32xf32> to vector<8x32xf32>
    %45 = vector.shape_cast %42 : vector<8x32xf32> to vector<1x8x32xf32>
    tpu.vector_store %arg6[%c0_17, %c0_18, %c0_19], %45 {strides = array<i32>} : memref<1x8x32xf32, #tpu.memory_space<vmem>>, vector<1x8x32xf32>,
    return
  }
  func.func @transform_0(%arg0: i32) -> (i32, i32, i32) {
    %c0_i32 = arith.constant 0 : i32
    %c0_i32_0 = arith.constant 0 : i32
    %c0_i32_1 = arith.constant 0 : i32
    return %arg0, %c0_i32, %c0_i32_0 : i32, i32, i32
  }
  func.func @transform_1(%arg0: i32) -> (i32, i32) {
    %c0_i32 = arith.constant 0 : i32
    %c0_i32_0 = arith.constant 0 : i32
    %c0_i32_1 = arith.constant 0 : i32
    return %c0_i32, %c0_i32_0 : i32, i32
  }
  func.func @transform_2(%arg0: i32) -> (i32, i32) {
    %c0_i32 = arith.constant 0 : i32
    %c0_i32_0 = arith.constant 0 : i32
    %c0_i32_1 = arith.constant 0 : i32
    return %c0_i32, %c0_i32_0 : i32, i32
  }
  func.func @transform_3(%arg0: i32) -> (i32, i32) {
    %c0_i32 = arith.constant 0 : i32
    %c0_i32_0 = arith.constant 0 : i32
    %c0_i32_1 = arith.constant 0 : i32
    return %c0_i32, %c0_i32_0 : i32, i32
  }
  func.func @transform_4(%arg0: i32) -> (i32, i32) {
    %c0_i32 = arith.constant 0 : i32
    %c0_i32_0 = arith.constant 0 : i32
    %c0_i32_1 = arith.constant 0 : i32
    return %c0_i32, %c0_i32_0 : i32, i32
  }
  func.func @transform_5(%arg0: i32) -> (i32, i32, i32) {
    %c0_i32 = arith.constant 0 : i32
    %c0_i32_0 = arith.constant 0 : i32
    %c0_i32_1 = arith.constant 0 : i32
    return %arg0, %c0_i32, %c0_i32_0 : i32, i32, i32
  }
}

</mosaic_0001>

<bundles_post_ra>
// kernel: tpu_custom_call.1
= control target key start
LH: loop header
LB: loop body
LE: loop exit
PB: predicated region body
PF: predicated region fallthrough
CT: control target
= control target key end

     0   :  { %10 = vsyncpa [#allocation3], 0  ;;  %s2295_s0 = inlined_call_operand.hbm [shape: bf16[2,8,32], index: 0, kind: input, shape index: {}]   ;;  %s2296_s1 = inlined_call_operand.hbm [shape: bf16[32,96], index: 1, kind: input, shape index: {}]   ;;  %s2297_s2 = inlined_call_operand.vmem [shape: f32[1,96], index: 2, kind: input, shape index: {}]   ;;  %s2298_s3 = inlined_call_operand.hbm [shape: bf16[32,32], index: 3, kind: input, shape index: {}]   ;;  %s2299_s4 = inlined_call_operand.vmem [shape: f32[1,32], index: 4, kind: input, shape index: {}]   ;;  %s2300_s5 = inlined_call_operand.hbm [shape: f32[2,8,32], index: 5, kind: output, shape index: {}]  }
   0x1   :  { %12 = vsyncpa [#allocation3 + $0x1], 0 }
   0x2   :  { %13 = vsyncpa [#allocation6], 0 }
   0x3   :  { %14 = vsyncpa [#allocation4], 0 }
   0x4   :  { %16 = vsyncpa [#allocation4 + $0x1], 0  ;;  %s1967_s18 = smov 0   ;;  %s1969_s19 = smov 0  }
   0x5   :  { %s1971_s20 = smov 0   ;;  %s1973_s21 = smov 0  }
   0x6 LB: > { %s1988_s22 = sadd.s32 4294967295, %s1917_s21   ;;  %s1542_s23 = sadd.s32 4294967294, %s1917_s21   ;;  %s1917_s21 = sphi %s1973_s21, %s2322_s21   ;;  %s1913_s20 = sphi %s1971_s20, %s2321_s20   ;;  %s1909_s19 = sphi %s1969_s19, %s2320_s19   ;;  %s1905_s18 = sphi %s1967_s18, %s2319_s18  }
   0x7   : > { %p42_p0 = scmp.ne.s32.totalorder %s1909_s19, %s1905_s18  ;;  %p2301_p1 = scmp.eq.s32.totalorder %s1988_s22, 0 }
   0x8   : > { %p156_p3 = scmp.eq.s32.totalorder %s1542_s23, 1  ;;  %p1543_p5 = scmp.ge.s32.totalorder %s1917_s21, 1 }
   0x9   : > { %p1997_p4 = por %p2301_p1, %p42_p0  ;;  %p163_p7 = scmp.lt.s32.totalorder %s1917_s21, 3 }
   0xa   : > { %p2002_p6 = por %p156_p3, %p42_p0  ;;  %s1919_s27 = smov [#allocation5]  }
   0xb   : > { %s2305_s24 = scalar_select %p1997_p4, 1, 0 }
   0xc   : > { %s2306_s25 = scalar_select %p2002_p6, 1, 0 }
   0xd   : > { %p2007_p8 = pnand %p1543_p5, %p163_p7  ;;  %s175_s28 = sshll.u32 %s1919_s27, 4  ;;  %s176_s28 = int_to_ptr.vmem [resolvable:$true] %s175_s28 }
   0xe   : > { %s1920_s30 = smov [#allocation7]   ;;  %s1780_s7 = scalar_lea.vmem %s176_s28, 256 }
   0xf   : > { %s2307_s26 = scalar_select %p2007_p8, 1, 0 }
  0x10   : > { %p1680_p9 = pneg %p2007_p8  ;;  %s191_s6 = sshll.u32 %s1920_s30, 4  ;;  %s192_s6 = int_to_ptr.vmem [resolvable:$true] %s191_s6 }
  0x11   : > { %p1781_p13 = scmp.ne.s32.totalorder %s176_s28, %s1780_s7  ;;  %p1788_p5 = scmp.lt.s32.totalorder %s176_s28, %s176_s28 }
  0x12   : > { %p2016_p11 = pnand %p1680_p9, %p2301_p1  ;;  %p1789_p7 = scmp.lt.s32.totalorder %s1780_s7, %s1780_s7 }
  0x14   : > { %p1771_p12 = pneg %p2016_p11  ;;  %p1790_p10 = por %p1789_p7, %p1788_p5 }
  0x16   : > { %p1783_p0 = pnand %p1781_p13, %p1771_p12 }
  0x18   : > { %p1784_p3 = pneg %p1783_p0 }
  0x1a   : > { %p1791_p9 = pnand %p1790_p10, %p1784_p3 }
  0x1c   : > { %1794 = shalt.err (!%p1791_p9)
}
  0x1d   : > { %s1921_s8 = smov 64   ;;  %s1922_s9 = smov 4  }
  0x1e   : > { %1683 = dma.hbm_to_vmem [thread:$0]  (!%p2016_p11), %s2296_s1, 256, %s176_s28, [#allocation6], %s1921_s8, %s1921_s8, %s1922_s9  }
  0x1f   : > { %s1806_s12 = scalar_lea.vmem %s192_s6, 256  ;;  %p1814_p2 = scmp.lt.s32.totalorder %s192_s6, %s192_s6 }
  0x20   : > { %p1807_p1 = scmp.ne.s32.totalorder %s192_s6, %s1806_s12  ;;  %p1815_p6 = scmp.lt.s32.totalorder %s1806_s12, %s1806_s12 }
  0x22   : > { %p1809_p13 = pnand %p1807_p1, %p1771_p12  ;;  %p1816_p5 = por %p1815_p6, %p1814_p2 }
  0x24   : > { %p1810_p0 = pneg %p1809_p13 }
  0x26   : > { %p1817_p10 = pnand %p1816_p5, %p1810_p0 }
  0x28   : > { %1820 = shalt.err (!%p1817_p10)
}
  0x29   : > { %1686 = dma.hbm_to_vmem [thread:$0]  (!%p2016_p11), %s2298_s3, 256, %s192_s6, [#allocation6], %s1921_s8, %s1921_s8, %s1922_s9  }
  0x2a   : > { %s2039_s15 = sadd.s32 1, %s1917_s21   ;;  %s29_s16 = sadd.s32 1, %s1913_s20 }
  0x2b   : > { %s26_s17 = ssub.s32 %s1917_s21, %s2039_s15  ;;  %p36_p1 = scmp.ne.s32.totalorder %s1913_s20, %s1909_s19 }
  0x2c   : > { %p27_p2 = scmp.eq.s32.totalorder %s26_s17, 0  ;;  %p37_p6 = scmp.eq.s32.totalorder %s1917_s21, 0 }
  0x2d   : > { %p2309_p12 = scmp.eq.s32.totalorder %s1988_s22, 1  ;;  %p1697_p7 = scmp.lt.s32.totalorder %s1917_s21, 2 }
  0x2e   : > { %s2055_s27 = scalar_select %p27_p2, %s1913_s20, %s29_s16  }
  0x2f   : > { %p2049_p3 = por %p2309_p12, %p36_p1  ;;  %p38_p9 = por %p37_p6, %p36_p1 }
  0x30   : > { %s208_s28 = sand.u32 1, %s1913_s20   ;;  %s1548_s30 = sshll.u32 %s1917_s21, 6 }
  0x31   : > { %s2310_s23 = scalar_select %p2049_p3, 1, 0 }
  0x32   : > { %s1547_s29 = sshll.u32 %s208_s28, 2  ;;  %s2062_s8 = scalar_lea.hbm %s2295_s0, %s1548_s30 }
  0x33   : > { %s212_s9 = scalar_lea.vmem [#allocation2], %s1547_s29  ;;  %p2064_p11 = pnand %p1697_p7, %p38_p9 }
  0x34   : > { %s219_s10 = sshll.u32 %s212_s9, 4  ;;  %s209_s12 = scalar_lea.sflag [#allocation3], %s208_s28  ;;  %s220_s10 = int_to_ptr.vmem [resolvable:$true] %s219_s10 }
  0x35   : > { %s1821_s13 = scalar_lea.hbm %s2062_s8, 64  ;;  %p1823_p0 = pneg %p2064_p11 }
  0x36   : > { %p1822_p13 = scmp.ne.s32.totalorder %s2062_s8, %s1821_s13  ;;  %s1826_s17 = scalar_lea.hbm %s2295_s0, 128 }
  0x37   : > { %p1827_p1 = scmp.lt.s32.totalorder %s2062_s8, %s2295_s0  ;;  %p1828_p2 = scmp.lt.s32.totalorder %s1826_s17, %s1821_s13 }
  0x38   : > { %p1824_p5 = pnand %p1823_p0, %p1822_p13 }
  0x39   : > { %p1829_p6 = por %p1828_p2, %p1827_p1 }
  0x3a   : > { %p1825_p10 = pneg %p1824_p5 }
  0x3c   : > { %p1830_p12 = pnand %p1829_p6, %p1825_p10 }
  0x3e   : > { %1833 = shalt.err (!%p1830_p12)
}
  0x3f   : > { %s1834_s6 = scalar_lea.vmem %s220_s10, 64  ;;  %s1923_s28 = smov [#allocation2]  }
  0x40   : > { %p1835_p7 = scmp.ne.s32.totalorder %s220_s10, %s1834_s6  ;;  %s1839_s7 = sshll.u32 %s1923_s28, 4  ;;  %s1840_s7 = int_to_ptr.vmem [resolvable:$false] %s1839_s7 }
  0x41   : > { %s1841_s9 = scalar_lea.vmem %s1840_s7, 128  ;;  %p1842_p13 = scmp.lt.s32.totalorder %s220_s10, %s1840_s7 }
  0x42   : > { %p1837_p9 = pnand %p1835_p7, %p1823_p0  ;;  %p1843_p5 = scmp.lt.s32.totalorder %s1841_s9, %s1834_s6 }
  0x44   : > { %p1838_p3 = pneg %p1837_p9  ;;  %p1844_p4 = por %p1843_p5, %p1842_p13 }
  0x46   : > { %p1845_p8 = pnand %p1844_p4, %p1838_p3 }
  0x48   : > { %1848 = shalt.err (!%p1845_p8)
}
  0x49   : > { %1690 = dma.hbm_to_vmem [thread:$0]  (!%p2064_p11), %s2062_s8, 64, %s220_s10, %s209_s12  }
  0x4a   : > { %p2312_p10 = scmp.ne.s32.totalorder %s2307_s26, 0 }
  0x4b   : > { %s2085_s13 = sand.u32 (!%p2312_p10), 1, %s1909_s19   ;;  %p2313_p0 = scmp.ne.s32.totalorder (!%p2312_p10), %s2305_s24, 0 }
  0x4c   : > { %228 = sbr.rel (%p2312_p10) target bundleno = 1473 (0x5c1), region = 40  ;;  %s1550_s14 = sshll.u32 (!%p2312_p10), %s2085_s13, 2 }
  0x4d   : > { %s231_s16 = scalar_lea.sflag (!%p2312_p10), [#allocation3], %s2085_s13  ;;  %s234_s17 = scalar_lea.vmem (!%p2312_p10), [#allocation2], %s1550_s14 }
  0x51   : > { %1892 = dma.done.wait (%p2313_p0), %s231_s16, 64  }
  0x52   : > { %1894 = vsyncadd (%p2313_p0), %s231_s16, 4294967232  ;;  %p2314_p4 = scmp.eq.s32.totalorder %s1988_s22, 0 }
  0x54   : > { %1896 = dma.done.wait (%p2314_p4), [#allocation6], 512   ;;  %p2315_p8 = pmov %p2314_p4 }
  0x55   : > { %v1924_v0 = vmov 0.0   ;;  %vm1925_vm0 = vmmov 0   ;;  %v1749_v1 = vld [vmem:[#allocation5 + $0x8] sm:$0xff]   ;;  %v1750_v2 = vld [vmem:[#allocation5] sm:$0xff]   ;;  %v270_v3 = vld [vmem:[%s234_s17] sm:$0xf]  ;;  %v353_v15 = vlaneseq }
  0x56   : > { %1898 = vsyncadd (%p2315_p8), [#allocation6], 4294966784  ;;  %1604 = vmatprep.subr.bf16.mxu0 %v1924_v0  ;;  %1608 = vmatprep.mubr.msk.bf16.mxu0 %vm1925_vm0, %v1924_v0  ;;  %vm294_vm1 = vcmask 261120   ;;  %v1554_v4 = vld [vmem:[%s2297_s2] ss:$0 sm:$0xff]  ;;  %s1926_s8 = smov 104  }
  0x57   : > { %1612 = vmatprep.subr.bf16.mxu1 %v1924_v0  ;;  %1614 = vmatprep.mubr.msk.bf16.mxu1 %vm1925_vm0, %v1924_v0  ;;  %s1927_s10 = smov 120   ;;  %s1928_s11 = smov 96   ;;  %v1931_v13 = vmov 1983009808   ;;  %v354_v17 = vshrl.u32 %v353_v15, 7  ;;  %vm792_vm2 = vcmask 64512  }
  0x58   : > { %1605 = vmatpush3.bf16.msra.mxu0 %v1749_v1  ;;  %s1929_s12 = smov 112   ;;  %s1930_s30 = smov 64   ;;  %v351_v14 = vunpack.c.l.s4 %v1931_v13  ;;  %v1932_v18 = vmov 1934713408   ;;  %vm1028_vm3 = vcmask 1043456   ;;  %vm1367_vm4 = vcmask 130048  }
  0x59   : > { %1606 = vmatprep.subr.bf16.mxu0 %v1924_v0  ;;  %v383_v19 = vunpack.c.l.s4 %v1932_v18  ;;  %s1933_s29 = smov 16   ;;  %s1934_s6 = smov 8   ;;  %vm1369_vm5 = vcmask 195584  }
  0x5a   : > { %v352_v16 = vunpack.c.0.s8 %v351_v14  ;;  %s1935_s28 = smov 24   ;;  %s1553_s7 = sshll.u32 %s2085_s13, 3 }
  0x5b   : > { %v384_v25 = vunpack.c.0.s8 %v383_v19  ;;  %s1579_s16 = sshll.u32 %s1988_s22, 7  ;;  %s268_s17 = scalar_lea.vmem [#allocation8], %s1553_s7 }
  0x5c   : > { %1607 = vmatpush3.bf16.msra.mxu0 %v1750_v2  ;;  %v2121_v22 = vsub.s32 %v352_v16, %v354_v17  ;;  %s1453_s24 = sshll.u32 %s268_s17, 4  ;;  %p2316_p11 = scmp.ne.s32.totalorder %s2310_s23, 0  ;;  %s2253_s24 = int_to_ptr.vmem [resolvable:$true] %s1453_s24 }
  0x5d   : > { %1618 = vmatprep.subr.bf16.mxu0 %v1924_v0  ;;  %v2129_v32 = vsub.s32 %v384_v25, %v354_v17  ;;  %s1849_s22 = scalar_lea.vmem %s2253_s24, 128 }
  0x5e   : > { %p1850_p3 = scmp.ne.s32.totalorder %s2253_s24, %s1849_s22 }
  0x5f   : > { %1609 = vmatmul.mubr.msk.bf16.vlgmr.msra.gmra.mxu0 %vm294_vm1, %v270_v3 }
  0x60   : > { %1620 = vmatprep.mubr.msk.bf16.mxu0 %vm1925_vm0, %v1924_v0  ;;  %p1851_p1 = pnand %p1850_p3, %p2316_p11 }
  0x62   : > { %p1852_p2 = pneg %p1851_p1 }
 0x11f   : > { %v332_v5 = vpop.f32.mrf.mxu0 }
 0x120   : > { %v333_v6 = vadd.f32 %v1554_v4, %v332_v5 }
 0x121   : > { %v1610_v7 = vpop.f32.mrf.mxu0 }
 0x122   : > { %345 = vrot.lane.b32.xlu1 %v333_v6, %s1926_s8  ;;  %339 = vrot.lane.b32.xlu0 %v333_v6, %s1927_s10  ;;  %s2251_s10 = scalar_lea.hbm %s2300_s5, %s1579_s16 }
 0x123   : > { %v335_v8 = vpop.f32.mrf.mxu0 }
 0x125   : > { %v1611_v9 = vpop.f32.mrf.mxu0 }
 0x126   : > { %488 = vrot.lane.b32.xlu1 %v333_v6, %s1928_s11  ;;  %342 = vrot.lane.b32.xlu0 %v333_v6, %s1929_s12  ;;  %s1936_s12 = smov [#allocation8]  }
 0x194   : > { %v340_v10 = vpop.permute.xlu0 %339  ;;  %v2111_v11 = vpop.permute.xlu1 %345 }
 0x195   : > { %490 = vrot.lane.b32.xlu0 %v340_v10, %s1928_s11  ;;  %v364_v23 = vcombine.low %v340_v10, %v2111_v11  ;;  %v365_v24 = vcombine.high %v340_v10, %v2111_v11 }
 0x197   : > { %v372_v28 = vrot.slane %v364_v23, %v2121_v22  ;;  %v379_v29 = vrot.slane %v365_v24, %v2121_v22 }
 0x198   : > { %v2113_v12 = vpop.permute.xlu0 %342  ;;  %v489_v30 = vpop.permute.xlu1 %488 }
 0x199   : > { %494 = vrot.lane.b32.xlu0 %v2111_v11, %s1928_s11  ;;  %492 = vrot.lane.b32.xlu1 %v2113_v12, %s1928_s11  ;;  %v348_v20 = vcombine.low %v333_v6, %v2113_v12  ;;  %v349_v21 = vcombine.high %v333_v6, %v2113_v12  ;;  %s1440_s11 = scalar_lea.sflag [#allocation4], %s2085_s13 }
 0x19b   : > { %v356_v26 = vrot.slane %v348_v20, %v2121_v22  ;;  %v363_v27 = vrot.slane %v349_v21, %v2121_v22 }
 0x19d   : > { %640 = vrot.lane.b32.xlu0 %v333_v6, %s1930_s30  ;;  %642 = vrot.lane.b32.xlu1 %v340_v10, %s1930_s30  ;;  %v380_v33 = vcombine.low %v356_v26, %v372_v28  ;;  %v381_v34 = vcombine.high %v356_v26, %v372_v28  ;;  %v396_v35 = vcombine.low %v363_v27, %v379_v29 }
 0x19e   : > { %v397_v36 = vcombine.high %v363_v27, %v379_v29 }
 0x19f   : > { %v388_v43 = vrot.slane %v380_v33, %v2129_v32  ;;  %v395_v44 = vrot.slane %v381_v34, %v2129_v32  ;;  %v404_v45 = vrot.slane %v396_v35, %v2129_v32 }
 0x1a0   : > { %v411_v46 = vrot.slane %v397_v36, %v2129_v32 }
 0x1a1   : > { %v416_v55 = vcombine.low %v388_v43, %v395_v44  ;;  %v1558_v56 = vcombine.high %v388_v43, %v395_v44 }
 0x1a2   : > { %v432_v57 = vcombine.low %v404_v45, %v411_v46  ;;  %v1559_v58 = vcombine.high %v404_v45, %v411_v46 }
 0x1a3   : > { %v423_v4 = vrot.slane %v416_v55, %v2121_v22  ;;  %v431_v5 = vrot.slane %v1558_v56, %v2121_v22 }
 0x1a4   : > { %v439_v6 = vrot.slane %v432_v57, %v2121_v22  ;;  %v447_v7 = vrot.slane %v1559_v58, %v2121_v22 }
 0x1a5   : > { %v448_v20 = vcombine.low %v423_v4, %v431_v5  ;;  %v449_v36 = vcombine.high %v423_v4, %v431_v5 }
 0x1a6   : > { %v464_v21 = vcombine.low %v439_v6, %v447_v7 }
 0x1a7   : > { %v456_v29 = vrot.slane %v448_v20, %v2129_v32  ;;  %v463_v44 = vrot.slane %v449_v36, %v2129_v32 }
 0x207   : > { %v491_v31 = vpop.permute.xlu0 %490 }
 0x20b   : > { %v493_v37 = vpop.permute.xlu1 %492  ;;  %v495_v38 = vpop.permute.xlu0 %494 }
 0x20c   : > { %v500_v39 = vcombine.low %v489_v30, %v493_v37  ;;  %v501_v40 = vcombine.high %v489_v30, %v493_v37  ;;  %v516_v41 = vcombine.low %v491_v31, %v495_v38  ;;  %v517_v42 = vcombine.high %v491_v31, %v495_v38 }
 0x20d   : > { %v472_v30 = vrot.slane %v464_v21, %v2129_v32  ;;  %v465_v37 = vcombine.high %v439_v6, %v447_v7 }
 0x20e   : > { %v508_v47 = vrot.slane %v500_v39, %v2121_v22  ;;  %v515_v48 = vrot.slane %v501_v40, %v2121_v22  ;;  %v524_v49 = vrot.slane %v516_v41, %v2121_v22  ;;  %v531_v50 = vrot.slane %v517_v42, %v2121_v22 }
 0x20f   : > { %v480_v38 = vcombine.low %v456_v29, %v472_v30  ;;  %v481_v39 = vcombine.high %v456_v29, %v472_v30  ;;  %v479_v45 = vrot.slane %v465_v37, %v2129_v32 }
 0x210   : > { %v532_v51 = vcombine.low %v508_v47, %v524_v49  ;;  %v533_v52 = vcombine.high %v508_v47, %v524_v49  ;;  %v548_v53 = vcombine.low %v515_v48, %v531_v50  ;;  %v549_v54 = vcombine.high %v515_v48, %v531_v50 }
 0x211   : > { %v484_v42 = vpack.c.bf16 %v480_v38, %v480_v38  ;;  %v485_v43 = vpack.c.bf16 %v481_v39, %v481_v39  ;;  %v482_v48 = vcombine.low %v463_v44, %v479_v45  ;;  %v483_v49 = vcombine.high %v463_v44, %v479_v45 }
 0x212   : > { %v540_v59 = vrot.slane %v532_v51, %v2129_v32  ;;  %v547_v60 = vrot.slane %v533_v52, %v2129_v32  ;;  %v556_v61 = vrot.slane %v548_v53, %v2129_v32  ;;  %v563_v62 = vrot.slane %v549_v54, %v2129_v32 }
 0x213   : > { %v486_v50 = vpack.c.bf16 %v482_v48, %v482_v48  ;;  %v487_v51 = vpack.c.bf16 %v483_v49, %v483_v49 }
 0x214   : > { %v568_v63 = vcombine.low %v540_v59, %v547_v60  ;;  %v1560_v1 = vcombine.high %v540_v59, %v547_v60  ;;  %v584_v2 = vcombine.low %v556_v61, %v563_v62  ;;  %v1561_v3 = vcombine.high %v556_v61, %v563_v62 }
 0x216   : > { %v575_v8 = vrot.slane %v568_v63, %v2121_v22  ;;  %v583_v9 = vrot.slane %v1560_v1, %v2121_v22  ;;  %v591_v10 = vrot.slane %v584_v2, %v2121_v22  ;;  %v599_v13 = vrot.slane %v1561_v3, %v2121_v22 }
 0x218   : > { %v600_v14 = vcombine.low %v575_v8, %v583_v9  ;;  %v616_v15 = vcombine.low %v591_v10, %v599_v13  ;;  %v601_v16 = vcombine.high %v575_v8, %v583_v9  ;;  %v617_v17 = vcombine.high %v591_v10, %v599_v13  ;;  %v643_v9 = vpop.permute.xlu1 %642  ;;  %v641_v10 = vpop.permute.xlu0 %640 }
 0x21a   : > { %v608_v18 = vrot.slane %v600_v14, %v2129_v32  ;;  %v624_v19 = vrot.slane %v616_v15, %v2129_v32  ;;  %v615_v25 = vrot.slane %v601_v16, %v2129_v32  ;;  %v631_v26 = vrot.slane %v617_v17, %v2129_v32 }
 0x21c   : > { %v632_v23 = vcombine.low %v608_v18, %v624_v19  ;;  %v633_v24 = vcombine.high %v608_v18, %v624_v19  ;;  %v634_v34 = vcombine.low %v615_v25, %v631_v26  ;;  %v635_v35 = vcombine.high %v615_v25, %v631_v26 }
 0x21e   : > { %v636_v27 = vpack.c.bf16 %v632_v23, %v632_v23  ;;  %v637_v28 = vpack.c.bf16 %v633_v24, %v633_v24  ;;  %v638_v40 = vpack.c.bf16 %v634_v34, %v634_v34  ;;  %v639_v41 = vpack.c.bf16 %v635_v35, %v635_v35 }
 0x220   : > { %v797_v31 = vsel %vm792_vm2, %v636_v27, 0  ;;  %v843_v33 = vsel %vm792_vm2, %v637_v28, 0  ;;  %v889_v46 = vsel %vm792_vm2, %v638_v40, 0  ;;  %v935_v47 = vsel %vm792_vm2, %v639_v41, 0 }
 0x221   : > { %1613 = vmatpush3.bf16.xpose.msra.mxu1 %v797_v31  ;;  %1619 = vmatpush3.bf16.xpose.msra.mxu0 %v843_v33 }
 0x222   : > { %1624 = vmatprep.subr.bf16.mxu1 %v1924_v0  ;;  %1630 = vmatprep.subr.bf16.mxu0 %v1924_v0 }
 0x228   : > { %1615 = vmatmul.mubr.msk.bf16.vlgmr.msra.gmra.mxu1 %vm792_vm2, %v484_v42  ;;  %1621 = vmatmul.mubr.msk.bf16.vlgmr.msra.gmra.mxu0 %vm792_vm2, %v485_v43 }
 0x229   : > { %1625 = vmatpush3.bf16.xpose.msra.mxu1 %v889_v46  ;;  %1631 = vmatpush3.bf16.xpose.msra.mxu0 %v935_v47 }
 0x22a   : > { %1626 = vmatprep.mubr.msk.bf16.mxu1 %vm1925_vm0, %v1924_v0  ;;  %1632 = vmatprep.mubr.msk.bf16.mxu0 %vm1925_vm0, %v1924_v0 }
 0x22b   : > { %1636 = vmatprep.subr.bf16.mxu1 %v1924_v0  ;;  %1642 = vmatprep.subr.bf16.mxu0 %v1924_v0 }
 0x230   : > { %1627 = vmatmul.mubr.msk.bf16.vlgmr.msra.gmra.mxu1 %vm792_vm2, %v486_v50  ;;  %1633 = vmatmul.mubr.msk.bf16.vlgmr.msra.gmra.mxu0 %vm792_vm2, %v487_v51 }
 0x231   : > { %1638 = vmatprep.mubr.msk.bf16.mxu1 %vm1925_vm0, %v1924_v0  ;;  %1644 = vmatprep.mubr.msk.bf16.mxu0 %vm1925_vm0, %v1924_v0 }
 0x2e8   : > { %v833_v52 = vpop.f32.mrf.mxu1  ;;  %v879_v53 = vpop.f32.mrf.mxu0 }
 0x2e9   : > { %v977_v54 = vsel %vm792_vm2, %v833_v52, -inf  ;;  %v980_v55 = vsel %vm792_vm2, %v879_v53, -inf }
 0x2ea   : > { %978 = vmax.xlane.f32.xlu1 %v977_v54  ;;  %v1616_v56 = vpop.f32.mrf.mxu1  ;;  %981 = vmax.xlane.f32.xlu0 %v980_v55  ;;  %v1622_v57 = vpop.f32.mrf.mxu0 }
 0x2ec   : > { %v836_v58 = vpop.f32.mrf.mxu1  ;;  %v882_v59 = vpop.f32.mrf.mxu0 }
 0x2ee   : > { %v1617_v60 = vpop.f32.mrf.mxu1  ;;  %v1623_v61 = vpop.f32.mrf.mxu0 }
 0x2f0   : > { %v925_v62 = vpop.f32.mrf.mxu1  ;;  %v971_v63 = vpop.f32.mrf.mxu0 }
 0x2f1   : > { %v983_v1 = vsel %vm792_vm2, %v925_v62, -inf  ;;  %v986_v2 = vsel %vm792_vm2, %v971_v63, -inf }
 0x2f2   : > { %v1628_v3 = vpop.f32.mrf.mxu1  ;;  %984 = vmax.xlane.f32.xlu0 %v983_v1  ;;  %987 = vmax.xlane.f32.xlu1 %v986_v2  ;;  %v1634_v4 = vpop.f32.mrf.mxu0 }
 0x2f4   : > { %v928_v5 = vpop.f32.mrf.mxu1  ;;  %v974_v6 = vpop.f32.mrf.mxu0 }
 0x2f6   : > { %v1629_v7 = vpop.f32.mrf.mxu1  ;;  %v1635_v8 = vpop.f32.mrf.mxu0 }
 0x303   : > { %644 = vrot.lane.b32.xlu1 %v2113_v12, %s1930_s30 }
 0x308   : > { %646 = vrot.lane.b32.xlu0 %v2111_v11, %s1930_s30  ;;  %s1853_s30 = sshll.u32 %s1936_s12, 4  ;;  %s1854_s30 = int_to_ptr.vmem [resolvable:$false] %s1853_s30 }
 0x309   : > { %p1856_p6 = scmp.lt.s32.totalorder %s2253_s24, %s1854_s30 }
 0x373   : > { %v979_v13 = vpop.xlane.xlu1 %978  ;;  %v982_v14 = vpop.xlane.xlu0 %981 }
 0x374   : > { %v989_v15 = vmax.f32 %v979_v13, -1e+30  ;;  %v990_v16 = vmax.f32 %v982_v14, -1e+30 }
 0x376   : > { %v993_v17 = vsub.f32 %v833_v52, %v989_v15  ;;  %v994_v18 = vsub.f32 %v879_v53, %v990_v16 }
 0x378   : > { %v997_v19 = vmul.f32 1.442695, %v993_v17  ;;  %v999_v20 = vmul.f32 1.442695, %v994_v18 }
 0x37a   : > { %1753 = vpow2.f32 %v997_v19 }
 0x37b   : > { %1755 = vpow2.f32 %v999_v20  ;;  %v985_v21 = vpop.xlane.xlu0 %984  ;;  %v988_v23 = vpop.xlane.xlu1 %987 }
 0x37c   : > { %v991_v24 = vmax.f32 %v985_v21, -1e+30  ;;  %v992_v25 = vmax.f32 %v988_v23, -1e+30 }
 0x37e   : > { %v995_v12 = vsub.f32 %v925_v62, %v991_v24  ;;  %v996_v26 = vsub.f32 %v971_v63, %v992_v25 }
 0x37f   : > { %v647_v27 = vpop.permute.xlu0 %646  ;;  %v645_v11 = vpop.permute.xlu1 %644 }
 0x380   : > { %v1001_v28 = vmul.f32 1.442695, %v995_v12  ;;  %v1003_v29 = vmul.f32 1.442695, %v996_v26  ;;  %v668_v30 = vcombine.low %v643_v9, %v647_v27  ;;  %v669_v31 = vcombine.high %v643_v9, %v647_v27 }
 0x381   : > { %v652_v33 = vcombine.low %v641_v10, %v645_v11  ;;  %v653_v34 = vcombine.high %v641_v10, %v645_v11 }
 0x382   : > { %1757 = vpow2.f32 %v1001_v28  ;;  %v676_v35 = vrot.slane %v668_v30, %v2121_v22  ;;  %v683_v36 = vrot.slane %v669_v31, %v2121_v22 }
 0x383   : > { %1759 = vpow2.f32 %v1003_v29  ;;  %v660_v37 = vrot.slane %v652_v33, %v2121_v22  ;;  %v667_v38 = vrot.slane %v653_v34, %v2121_v22 }
 0x385   : > { %v684_v39 = vcombine.low %v660_v37, %v676_v35  ;;  %v685_v40 = vcombine.high %v660_v37, %v676_v35  ;;  %v700_v41 = vcombine.low %v667_v38, %v683_v36  ;;  %v701_v42 = vcombine.high %v667_v38, %v683_v36 }
 0x387   : > { %v1754_v43 = vpop.eup %1753  ;;  %v692_v44 = vrot.slane %v684_v39, %v2129_v32  ;;  %v699_v45 = vrot.slane %v685_v40, %v2129_v32  ;;  %v708_v46 = vrot.slane %v700_v41, %v2129_v32  ;;  %v715_v47 = vrot.slane %v701_v42, %v2129_v32 }
 0x388   : > { %v1756_v48 = vpop.eup %1755  ;;  %v1005_v49 = vsel %vm792_vm2, %v1754_v43, 0.0  ;;  %v1021_v20 = vpack.c.bf16 %v1754_v43, %v1754_v43 }
 0x389   : > { %v720_v50 = vcombine.low %v692_v44, %v699_v45  ;;  %v1562_v51 = vcombine.high %v692_v44, %v699_v45  ;;  %v736_v52 = vcombine.low %v708_v46, %v715_v47  ;;  %v1563_v53 = vcombine.high %v708_v46, %v715_v47  ;;  %1006 = vadd.xlane.f32.xlu1 %v1005_v49 }
 0x38a   : > { %v1008_v54 = vsel %vm792_vm2, %v1756_v48, 0.0  ;;  %v1022_v21 = vpack.c.bf16 %v1756_v48, %v1756_v48 }
 0x38b   : > { %v727_v55 = vrot.slane %v720_v50, %v2121_v22  ;;  %v735_v56 = vrot.slane %v1562_v51, %v2121_v22  ;;  %v743_v57 = vrot.slane %v736_v52, %v2121_v22  ;;  %v751_v58 = vrot.slane %v1563_v53, %v2121_v22  ;;  %1009 = vadd.xlane.f32.xlu0 %v1008_v54 }
 0x38d   : > { %v752_v59 = vcombine.low %v727_v55, %v735_v56  ;;  %v768_v60 = vcombine.low %v743_v57, %v751_v58  ;;  %v753_v61 = vcombine.high %v727_v55, %v735_v56  ;;  %v769_v62 = vcombine.high %v743_v57, %v751_v58 }
 0x38f   : > { %v1758_v63 = vpop.eup %1757  ;;  %v760_v1 = vrot.slane %v752_v59, %v2129_v32  ;;  %v776_v2 = vrot.slane %v768_v60, %v2129_v32  ;;  %v767_v3 = vrot.slane %v753_v61, %v2129_v32  ;;  %v783_v4 = vrot.slane %v769_v62, %v2129_v32 }
 0x390   : > { %v1760_v5 = vpop.eup %1759  ;;  %v1011_v6 = vsel %vm792_vm2, %v1758_v63, 0.0  ;;  %v1023_v25 = vpack.c.bf16 %v1758_v63, %v1758_v63 }
 0x391   : > { %1012 = vadd.xlane.f32.xlu0 %v1011_v6  ;;  %v1014_v7 = vsel %vm792_vm2, %v1760_v5, 0.0  ;;  %v784_v8 = vcombine.low %v760_v1, %v776_v2  ;;  %v785_v9 = vcombine.high %v760_v1, %v776_v2  ;;  %v786_v10 = vcombine.low %v767_v3, %v783_v4 }
 0x392   : > { %1015 = vadd.xlane.f32.xlu1 %v1014_v7  ;;  %v787_v13 = vcombine.high %v767_v3, %v783_v4  ;;  %v1024_v12 = vpack.c.bf16 %v1760_v5, %v1760_v5  ;;  %v1751_v7 = vld [vmem:[#allocation7 + $0x8] sm:$0xff]  }
 0x393   : > { %v788_v14 = vpack.c.bf16 %v784_v8, %v784_v8  ;;  %v789_v15 = vpack.c.bf16 %v785_v9, %v785_v9  ;;  %v790_v18 = vpack.c.bf16 %v786_v10, %v786_v10 }
 0x394   : > { %v791_v19 = vpack.c.bf16 %v787_v13, %v787_v13 }
 0x395   : > { %v1030_v16 = vsel %vm1028_vm3, %v788_v14, 0  ;;  %v1076_v17 = vsel %vm1028_vm3, %v789_v15, 0  ;;  %v1122_v23 = vsel %vm1028_vm3, %v790_v18, 0  ;;  %v1752_v18 = vld [vmem:[#allocation7] sm:$0xff]  }
 0x396   : > { %1637 = vmatpush3.bf16.msra.mxu1 %v1030_v16  ;;  %1643 = vmatpush3.bf16.msra.mxu0 %v1076_v17  ;;  %v1168_v24 = vsel %vm1028_vm3, %v791_v19, 0 }
 0x397   : > { %1648 = vmatprep.subr.bf16.mxu1 %v1924_v0  ;;  %1654 = vmatprep.subr.bf16.mxu0 %v1924_v0 }
 0x399   : > { %1639 = vmatmul.mubr.msk.bf16.vlgmr.msra.gmra.mxu1 %vm792_vm2, %v1021_v20  ;;  %1645 = vmatmul.mubr.msk.bf16.vlgmr.msra.gmra.mxu0 %vm792_vm2, %v1022_v21 }
 0x39a   : > { %1649 = vmatpush3.bf16.msra.mxu1 %v1122_v23  ;;  %1655 = vmatpush3.bf16.msra.mxu0 %v1168_v24 }
 0x39b   : > { %1650 = vmatprep.mubr.msk.bf16.mxu1 %vm1925_vm0, %v1924_v0  ;;  %1656 = vmatprep.mubr.msk.bf16.mxu0 %vm1925_vm0, %v1924_v0 }
 0x39c   : > { %1660 = vmatprep.subr.bf16.mxu1 %v1924_v0 }
 0x3a1   : > { %1651 = vmatmul.mubr.msk.bf16.vlgmr.msra.gmra.mxu1 %vm792_vm2, %v1023_v25  ;;  %1657 = vmatmul.mubr.msk.bf16.vlgmr.msra.gmra.mxu0 %vm792_vm2, %v1024_v12 }
 0x3a2   : > { %1664 = vmatprep.mubr.msk.bf16.mxu1 %vm1925_vm0, %v1924_v0  ;;  %1661 = vmatpush3.bf16.msra.mxu1 %v1751_v7 }
 0x3a3   : > { %1662 = vmatprep.subr.bf16.mxu1 %v1924_v0 }
 0x3a6   : > { %1663 = vmatpush3.bf16.msra.mxu1 %v1752_v18 }
 0x412   : > { %v1007_v27 = vpop.xlane.xlu1 %1006 }
 0x413   : > { %v1017_v28 = vmax.f32 %v1007_v27, 1e-30 }
 0x414   : > { %v1010_v26 = vpop.xlane.xlu0 %1009 }
 0x415   : > { %v1018_v30 = vmax.f32 %v1010_v26, 1e-30  ;;  %1761 = vrcp.f32 %v1017_v28 }
 0x417   : > { %1763 = vrcp.f32 %v1018_v30 }
 0x41a   : > { %v1013_v11 = vpop.xlane.xlu0 %1012 }
 0x41b   : > { %v1016_v29 = vpop.xlane.xlu1 %1015  ;;  %v1019_v31 = vmax.f32 %v1013_v11, 1e-30 }
 0x41c   : > { %v1020_v33 = vmax.f32 %v1016_v29, 1e-30 }
 0x41d   : > { %1765 = vrcp.f32 %v1019_v31 }
 0x41e   : > { %1767 = vrcp.f32 %v1020_v33 }
 0x422   : > { %v1762_v40 = vpop.eup %1761 }
 0x424   : > { %v1764_v41 = vpop.eup %1763 }
 0x42a   : > { %v1766_v44 = vpop.eup %1765 }
 0x42b   : > { %v1768_v45 = vpop.eup %1767 }
 0x459   : > { %v1066_v34 = vpop.f32.mrf.mxu1  ;;  %v1112_v35 = vpop.f32.mrf.mxu0 }
 0x45a   : > { %v1211_v48 = vmul.f32 %v1762_v40, %v1066_v34  ;;  %v1213_v49 = vmul.f32 %v1764_v41, %v1112_v35 }
 0x45b   : > { %v1640_v36 = vpop.f32.mrf.mxu1  ;;  %v1646_v37 = vpop.f32.mrf.mxu0 }
 0x45d   : > { %v1069_v38 = vpop.f32.mrf.mxu1  ;;  %v1115_v39 = vpop.f32.mrf.mxu0 }
 0x45e   : > { %v1574_v39 = vld [vmem:[%s2299_s4] ss:$0 sm:$0xff] }
 0x45f   : > { %v1641_v42 = vpop.f32.mrf.mxu1  ;;  %v1647_v43 = vpop.f32.mrf.mxu0 }
 0x461   : > { %v1158_v46 = vpop.f32.mrf.mxu1  ;;  %v1204_v47 = vpop.f32.mrf.mxu0 }
 0x462   : > { %v1215_v50 = vmul.f32 %v1766_v44, %v1158_v46  ;;  %v1217_v51 = vmul.f32 %v1768_v45, %v1204_v47 }
 0x463   : > { %v1652_v52 = vpop.f32.mrf.mxu1  ;;  %v1658_v53 = vpop.f32.mrf.mxu0 }
 0x464   : > { %v1218_v54 = vcombine.low %v1211_v48, %v1215_v50  ;;  %v1219_v55 = vcombine.high %v1211_v48, %v1215_v50  ;;  %v1234_v56 = vcombine.low %v1213_v49, %v1217_v51  ;;  %v1235_v57 = vcombine.high %v1213_v49, %v1217_v51 }
 0x465   : > { %v1161_v58 = vpop.f32.mrf.mxu1  ;;  %v1207_v59 = vpop.f32.mrf.mxu0 }
 0x466   : > { %v1226_v60 = vrot.slane %v1218_v54, %v2121_v22  ;;  %v1233_v61 = vrot.slane %v1219_v55, %v2121_v22  ;;  %v1242_v62 = vrot.slane %v1234_v56, %v2121_v22  ;;  %v1249_v63 = vrot.slane %v1235_v57, %v2121_v22 }
 0x467   : > { %v1653_v1 = vpop.f32.mrf.mxu1  ;;  %v1659_v2 = vpop.f32.mrf.mxu0 }
 0x468   : > { %v1250_v3 = vcombine.low %v1226_v60, %v1242_v62  ;;  %v1251_v4 = vcombine.high %v1226_v60, %v1242_v62  ;;  %v1266_v5 = vcombine.low %v1233_v61, %v1249_v63  ;;  %v1267_v6 = vcombine.high %v1233_v61, %v1249_v63 }
 0x46a   : > { %v1258_v8 = vrot.slane %v1250_v3, %v2129_v32  ;;  %v1265_v9 = vrot.slane %v1251_v4, %v2129_v32  ;;  %v1274_v10 = vrot.slane %v1266_v5, %v2129_v32  ;;  %v1281_v13 = vrot.slane %v1267_v6, %v2129_v32 }
 0x46c   : > { %v1286_v14 = vcombine.low %v1258_v8, %v1265_v9  ;;  %v1572_v15 = vcombine.high %v1258_v8, %v1265_v9  ;;  %v1302_v16 = vcombine.low %v1274_v10, %v1281_v13  ;;  %v1573_v17 = vcombine.high %v1274_v10, %v1281_v13 }
 0x46e   : > { %v1293_v19 = vrot.slane %v1286_v14, %v2121_v22  ;;  %v1301_v20 = vrot.slane %v1572_v15, %v2121_v22  ;;  %v1309_v21 = vrot.slane %v1302_v16, %v2121_v22  ;;  %v1317_v23 = vrot.slane %v1573_v17, %v2121_v22 }
 0x470   : > { %v1319_v24 = vcombine.high %v1293_v19, %v1301_v20  ;;  %v1335_v25 = vcombine.high %v1309_v21, %v1317_v23  ;;  %v1318_v12 = vcombine.low %v1293_v19, %v1301_v20  ;;  %v1334_v26 = vcombine.low %v1309_v21, %v1317_v23 }
 0x472   : > { %v1333_v0 = vrot.slane %v1319_v24, %v2129_v32  ;;  %v1349_v27 = vrot.slane %v1335_v25, %v2129_v32  ;;  %v1326_v11 = vrot.slane %v1318_v12, %v2129_v32  ;;  %v1342_v28 = vrot.slane %v1334_v26, %v2129_v32 }
 0x474   : > { %v1352_v29 = vcombine.low %v1333_v0, %v1349_v27  ;;  %v1351_v30 = vcombine.high %v1326_v11, %v1342_v28  ;;  %v1350_v31 = vcombine.low %v1326_v11, %v1342_v28  ;;  %v1353_v22 = vcombine.high %v1333_v0, %v1349_v27 }
 0x476   : > { %1359 = vrot.lane.b32.xlu1 %v1352_v29, %s1933_s29  ;;  %1355 = vrot.lane.b32.xlu0 %v1351_v30, %s1934_s6  ;;  %s1855_s29 = scalar_lea.vmem %s1854_s30, 256 }
 0x477   : > { %p1857_p12 = scmp.lt.s32.totalorder %s1855_s29, %s1849_s22 }
 0x479   : > { %p1858_p7 = por %p1857_p12, %p1856_p6 }
 0x47a   : > { %1363 = vrot.lane.b32.xlu1 %v1353_v22, %s1935_s28 }
 0x47b   : > { %p1859_p9 = pnand %p1858_p7, %p1852_p2 }
 0x4e8   : > { %v1360_v33 = vpop.permute.xlu1 %1359  ;;  %v1356_v34 = vpop.permute.xlu0 %1355 }
 0x4e9   : > { %v1366_v35 = vsel %vm792_vm2, %v1350_v31, %v1356_v34 }
 0x4ea   : > { %v1368_v32 = vsel %vm1367_vm4, %v1366_v35, %v1360_v33 }
 0x4ec   : > { %v1364_v36 = vpop.permute.xlu1 %1363 }
 0x4ed   : > { %v1370_v37 = vsel %vm1369_vm5, %v1368_v32, %v1364_v36 }
 0x4ee   : > { %v1371_v38 = vpack.c.bf16 %v1370_v37, %v1370_v37 }
 0x4f0   : > { %1665 = vmatmul.mubr.msk.bf16.vlgmr.msra.gmra.mxu1 %vm294_vm1, %v1371_v38 }
 0x5b0   : > { %v1432_v40 = vpop.f32.mrf.mxu1 }
 0x5b1   : > { %v1433_v41 = vadd.f32 %v1574_v39, %v1432_v40 }
 0x5b2   : > { %v1666_v42 = vpop.f32.mrf.mxu1 }
 0x5b3   : > { %1438 = vst.msk [vmem:[%s268_s17] sm:$0xff] %vm294_vm1, %v1433_v41 }
 0x5b4   : > { %v1435_v43 = vpop.f32.mrf.mxu1 }
 0x5b5   : > { %1862 = shalt.err (!%p1859_p9)
}
 0x5b6   : > { %s1863_s6 = scalar_lea.hbm %s2251_s10, 128  ;;  %s1867_s7 = scalar_lea.hbm %s2300_s5, 256 }
 0x5b7   : > { %p1864_p13 = scmp.ne.s32.totalorder %s2251_s10, %s1863_s6  ;;  %p1868_p0 = scmp.lt.s32.totalorder %s2251_s10, %s2300_s5 }
 0x5b8   : > { %p1869_p4 = scmp.lt.s32.totalorder %s1867_s7, %s1863_s6 }
 0x5b9   : > { %p1865_p5 = pnand %p1864_p13, %p2316_p11 }
 0x5ba   : > { %p1870_p8 = por %p1869_p4, %p1868_p0 }
 0x5bb   : > { %p1866_p10 = pneg %p1865_p5 }
 0x5bd   : > { %p1871_p3 = pnand %p1870_p8, %p1866_p10 }
 0x5bf   : > { %1874 = shalt.err (!%p1871_p3)
}
 0x5c0   : > { %1678 = dma.vmem_to_hbm [thread:$0]  (%p2316_p11), %s2253_s24, 128, %s2251_s10, %s1440_s11   ;;  %v1667_v44 = vpop.f32.mrf.mxu1 }
 0x5c1 PF: > { %s1465_s16 = sand.u32 1, %s1905_s18   ;;  %p2317_p1 = scmp.ne.s32.totalorder %s2306_s25, 0 }
 0x5c2   : > { %p2318_p2 = scmp.ge.s32.totalorder %s1917_s21, 2  ;;  %s1466_s17 = scalar_lea.sflag [#allocation4], %s1465_s16 }
 0x5c4   : > { %p1692_p6 = pnand %p2318_p2, %p2317_p1 }
 0x5c6   : > { %p1693_p12 = pneg %p1692_p6 }
 0x5c8   : > { %1900 = dma.done.wait (%p1693_p12), %s1466_s17, 128  }
 0x5c9   : > { %1902 = vsyncadd (%p1693_p12), %s1466_s17, 4294967168  ;;  %p19_p7 = scmp.ge.s32.totalorder %s2039_s15, 4   ;;  %s2319_s18 = smov %s1909_s19 }
 0x5ca   : > { %s2320_s19 = smov %s1913_s20  ;;  %s2321_s20 = smov %s2055_s27 }
 0x5cb   : > { %s2322_s21 = smov %s2039_s15  ;;  %21 = sbr.rel (!%p19_p7) target bundleno = 6 (0x6), region = 93 }
 0x5d0   :  { %1471 = vsyncpa [#allocation3], 1 }
 0x5d1   :  { %1473 = vsyncpa [#allocation3 + $0x1], 1 }
 0x5d2   :  { %1474 = vsyncpa [#allocation6], 1 }
 0x5d3   :  { %1475 = vsyncpa [#allocation4], 1 }
 0x5d4   :  { %1477 = vsyncpa [#allocation4 + $0x1], 1 }

</bundles_post_ra>
